<compile_context>
chip_gen: v7x
topology: tpu7x:2x2x1
jax: 0.10.0
libtpu: 0.0.40
codegen_flags: <defaults>
</compile_context>

<pallas_src>
import functools

import jax
import jax.numpy as jnp
from jax import lax
from jax.experimental import pallas as pl
from jax.experimental.pallas import tpu as pltpu

EPS = 1e-5
TM_MATMUL = 256          # row tile for the conv matmuls (sweepable; multiple of 8)
TM_ELTWISE = 512         # row tile for the elementwise BN kernels
LANE = 128               # channel padding target (TPU lane width)
VMEM_LIMIT = 48 * 1024 * 1024


def _round_up(x, m):
    return ((x + m - 1) // m) * m


def _cparams():
    return pltpu.CompilerParams(
        dimension_semantics=("parallel",),
        vmem_limit_bytes=VMEM_LIMIT,
    )


def _pad_cols(a, cp):
    """Zero-pad the last dim up to cp."""
    c = a.shape[-1]
    if c == cp:
        return a
    return jnp.pad(a, [(0, 0)] * (a.ndim - 1) + [(0, cp - c)])


# --------------------------------------------------------------------------
# Pallas kernels
# --------------------------------------------------------------------------
def _matmul_stats_kernel(p_ref, w_ref, y_ref, stat_ref, *, m_total, tm):
    """One row-tile of y = patches @ w (bf16 in, f32 acc on the MXU), plus
    per-tile partial per-channel sum / sum-of-squares for the BN statistics."""
    y = jnp.dot(p_ref[...], w_ref[...], preferred_element_type=jnp.float32)
    y_ref[...] = y
    # Mask rows beyond the true M (ragged last tile) out of the statistics.
    row = pl.program_id(0) * tm + lax.broadcasted_iota(jnp.int32, (tm, 1), 0)
    yv = jnp.where(row < m_total, y, 0.0)
    stat_ref[0, :, :] = jnp.concatenate(
        [jnp.sum(yv, axis=0, keepdims=True),
         jnp.sum(yv * yv, axis=0, keepdims=True)], axis=0)


def _bn_relu_kernel(y_ref, scale_ref, bias_ref, o_ref):
    o_ref[...] = jnp.maximum(
        y_ref[...] * scale_ref[...] + bias_ref[...], 0.0).astype(o_ref.dtype)


def _bn_residual_relu_kernel(y_ref, s_ref, b_ref, r_ref, rs_ref, rb_ref, o_ref):
    main = y_ref[...] * s_ref[...] + b_ref[...]
    res = r_ref[...] * rs_ref[...] + rb_ref[...]
    o_ref[...] = jnp.maximum(main + res, 0.0).astype(o_ref.dtype)


# --------------------------------------------------------------------------
# Kernel wrappers
# --------------------------------------------------------------------------
def conv_matmul_with_stats(patches_bf16, w_bf16, tm=TM_MATMUL):
    """patches: (M, K) bf16, w: (K, Cp) bf16 with Cp % 128 == 0.
    Returns y (M, Cp) f32 and per-channel sum / sum-of-squares, each (1, Cp)."""
    M, K = patches_bf16.shape
    Cp = w_bf16.shape[1]
    tm = min(tm, _round_up(M, 8))
    grid_m = pl.cdiv(M, tm)
    kernel = functools.partial(_matmul_stats_kernel, m_total=M, tm=tm)
    y, stats = pl.pallas_call(
        kernel,
        out_shape=(
            jax.ShapeDtypeStruct((M, Cp), jnp.float32),
            jax.ShapeDtypeStruct((grid_m, 2, Cp), jnp.float32),
        ),
        grid_spec=pltpu.PrefetchScalarGridSpec(
            num_scalar_prefetch=0,
            grid=(grid_m,),
            in_specs=[
                pl.BlockSpec((tm, K), lambda i: (i, 0)),
                pl.BlockSpec((K, Cp), lambda i: (0, 0)),   # resident weights
            ],
            out_specs=(
                pl.BlockSpec((tm, Cp), lambda i: (i, 0)),
                pl.BlockSpec((1, 2, Cp), lambda i: (i, 0, 0)),
            ),
        ),
        compiler_params=_cparams(),
    )(patches_bf16, w_bf16)
    s = jnp.sum(stats[:, 0, :], axis=0, keepdims=True)
    q = jnp.sum(stats[:, 1, :], axis=0, keepdims=True)
    return y, s, q


def bn_relu(y, scale, bias, out_dtype=jnp.bfloat16, tm=TM_ELTWISE):
    M, Cp = y.shape
    tm = min(tm, _round_up(M, 8))
    return pl.pallas_call(
        _bn_relu_kernel,
        out_shape=jax.ShapeDtypeStruct((M, Cp), out_dtype),
        grid_spec=pltpu.PrefetchScalarGridSpec(
            num_scalar_prefetch=0,
            grid=(pl.cdiv(M, tm),),
            in_specs=[
                pl.BlockSpec((tm, Cp), lambda i: (i, 0)),
                pl.BlockSpec((1, Cp), lambda i: (0, 0)),
                pl.BlockSpec((1, Cp), lambda i: (0, 0)),
            ],
            out_specs=pl.BlockSpec((tm, Cp), lambda i: (i, 0)),
        ),
        compiler_params=_cparams(),
    )(y, scale, bias)


def bn_residual_relu(y, scale, bias, res, rscale, rbias, tm=TM_ELTWISE):
    M, Cp = y.shape
    tm = min(tm, _round_up(M, 8))
    return pl.pallas_call(
        _bn_residual_relu_kernel,
        out_shape=jax.ShapeDtypeStruct((M, Cp), jnp.float32),
        grid_spec=pltpu.PrefetchScalarGridSpec(
            num_scalar_prefetch=0,
            grid=(pl.cdiv(M, tm),),
            in_specs=[
                pl.BlockSpec((tm, Cp), lambda i: (i, 0)),
                pl.BlockSpec((1, Cp), lambda i: (0, 0)),
                pl.BlockSpec((1, Cp), lambda i: (0, 0)),
                pl.BlockSpec((tm, Cp), lambda i: (i, 0)),
                pl.BlockSpec((1, Cp), lambda i: (0, 0)),
                pl.BlockSpec((1, Cp), lambda i: (0, 0)),
            ],
            out_specs=pl.BlockSpec((tm, Cp), lambda i: (i, 0)),
        ),
        compiler_params=_cparams(),
    )(y, scale, bias, res, rscale, rbias)


# --------------------------------------------------------------------------
# Glue: im2col, BN affine fold from accumulated stats
# --------------------------------------------------------------------------
def _im2col_3x3(x, stride):
    """x: (N, H, W, C) NHWC, 3x3 conv, padding=1.  Row order (n, ho, wo);
    column order (kh, kw, cin) to match the PyTorch OIHW weight layout."""
    N, H, W, C = x.shape
    xp = jnp.pad(x, ((0, 0), (1, 1), (1, 1), (0, 0)))
    Ho = (H + 2 - 3) // stride + 1
    Wo = (W + 2 - 3) // stride + 1
    cols = []
    for kh in range(3):
        for kw in range(3):
            cols.append(
                xp[:, kh:kh + (Ho - 1) * stride + 1:stride,
                      kw:kw + (Wo - 1) * stride + 1:stride, :]
            )
    p = jnp.concatenate(cols, axis=-1)  # (N, Ho, Wo, 9*C)
    return p.reshape(N * Ho * Wo, 9 * C), (N, Ho, Wo)


def _bn_affine(s, q, count, gamma_p, beta_p):
    """Fold training-mode BN (batch mean / biased var) into scale & bias."""
    mean = s / count
    var = jnp.maximum(q / count - mean * mean, 0.0)   # guard cancellation
    scale = gamma_p.reshape(1, -1) / jnp.sqrt(var + EPS)
    bias = beta_p.reshape(1, -1) - mean * scale
    return scale, bias


# --------------------------------------------------------------------------
# BasicBlock forward
# --------------------------------------------------------------------------
def basic_block_forward(x_nchw, params, stride):
    x = jnp.transpose(x_nchw, (0, 2, 3, 1)).astype(jnp.float32)  # -> NHWC
    N, H, W, Cin = x.shape
    w1, g1, b1 = params["w1"], params["g1"], params["b1"]
    w2, g2, b2 = params["w2"], params["g2"], params["b2"]
    Cout = w1.shape[0]
    Cp = _round_up(Cout, LANE)

    # weights: (Cout, Cin, kh, kw) -> (kh, kw, Cin, Cout) -> (K, Cout) -> pad -> bf16
    w1_2d = _pad_cols(jnp.transpose(w1, (2, 3, 1, 0)).reshape(9 * Cin, Cout),
                      Cp).astype(jnp.bfloat16)
    w2_2d = _pad_cols(jnp.transpose(w2, (2, 3, 1, 0)).reshape(9 * Cout, Cout),
                      Cp).astype(jnp.bfloat16)
    g1p, b1p = _pad_cols(g1.reshape(1, -1), Cp), _pad_cols(b1.reshape(1, -1), Cp)
    g2p, b2p = _pad_cols(g2.reshape(1, -1), Cp), _pad_cols(b2.reshape(1, -1), Cp)

    # conv1 (bf16 MXU matmul) + BN1 batch stats
    x_bf = x.astype(jnp.bfloat16)
    p1, (N_, Ho, Wo) = _im2col_3x3(x_bf, stride)
    M = N_ * Ho * Wo
    y1, s1, q1 = conv_matmul_with_stats(p1, w1_2d)
    sc1, bi1 = _bn_affine(s1, q1, M, g1p, b1p)

    # BN1 + ReLU fused, bf16 out (feeds conv2's im2col directly)
    h1 = bn_relu(y1, sc1, bi1, out_dtype=jnp.bfloat16)
    h1 = h1.reshape(N_, Ho, Wo, Cp)[..., :Cout]   # drop lane padding before conv2

    # conv2 + BN2 batch stats (BN2 applied inside the final fused kernel)
    p2, _ = _im2col_3x3(h1, 1)
    y2, s2, q2 = conv_matmul_with_stats(p2, w2_2d)
    sc2, bi2 = _bn_affine(s2, q2, M, g2p, b2p)

    # shortcut
    if stride != 1 or Cin != Cout:
        wsc, gsc, bsc = params["wsc"], params["gsc"], params["bsc"]
        wsc_2d = _pad_cols(jnp.transpose(wsc, (2, 3, 1, 0)).reshape(Cin, Cout),
                           Cp).astype(jnp.bfloat16)
        xs = x_bf[:, ::stride, ::stride, :].reshape(M, Cin)
        ysc, ss, qs = conv_matmul_with_stats(xs, wsc_2d)
        scs, bis = _bn_affine(ss, qs, M,
                              _pad_cols(gsc.reshape(1, -1), Cp),
                              _pad_cols(bsc.reshape(1, -1), Cp))
    else:
        ysc = _pad_cols(x.reshape(M, Cin), Cp)
        scs = _pad_cols(jnp.ones((1, Cout), jnp.float32), Cp)
        bis = jnp.zeros((1, Cp), jnp.float32)

    # BN2(main) + BN_sc(shortcut) + add + ReLU, one fused elementwise kernel
    out = bn_residual_relu(y2, sc2, bi2, ysc, scs, bis)      # (M, Cp) f32
    out = out[:, :Cout].reshape(N_, Ho, Wo, Cout)
    return jnp.transpose(out, (0, 3, 1, 2))                  # back to NCHW


# --------------------------------------------------------------------------
# Pure-JAX reference (for correctness check)
# --------------------------------------------------------------------------
def _ref_bn(y, gamma, beta):
    mean = y.mean(axis=(0, 2, 3), keepdims=True)
    var = y.var(axis=(0, 2, 3), keepdims=True)  # biased, like training-mode BN
    return (y - mean) / jnp.sqrt(var + EPS) * gamma.reshape(1, -1, 1, 1) \
        + beta.reshape(1, -1, 1, 1)


def basic_block_reference(x, params, stride):
    dn = ("NCHW", "OIHW", "NCHW")
    y1 = lax.conv_general_dilated(x, params["w1"], (stride, stride),
                                  ((1, 1), (1, 1)), dimension_numbers=dn)
    h1 = jnp.maximum(_ref_bn(y1, params["g1"], params["b1"]), 0.0)
    y2 = lax.conv_general_dilated(h1, params["w2"], (1, 1),
                                  ((1, 1), (1, 1)), dimension_numbers=dn)
    main = _ref_bn(y2, params["g2"], params["b2"])
    Cin, Cout = x.shape[1], params["w1"].shape[0]
    if stride != 1 or Cin != Cout:
        ysc = lax.conv_general_dilated(x, params["wsc"], (stride, stride),
                                       ((0, 0), (0, 0)), dimension_numbers=dn)
        sc = _ref_bn(ysc, params["gsc"], params["bsc"])
    else:
        sc = x
    return jnp.maximum(main + sc, 0.0)


# --------------------------------------------------------------------------
if __name__ == "__main__":
    key = jax.random.PRNGKey(0)
    N, Cin, Cout, H, W, stride = 2, 4, 8, 16, 16, 2  # exercises conv shortcut path

    ks = jax.random.split(key, 8)
    params = {
        "w1": 0.1 * jax.random.normal(ks[0], (Cout, Cin, 3, 3), jnp.float32),
        "g1": 1.0 + 0.1 * jax.random.normal(ks[1], (Cout,), jnp.float32),
        "b1": 0.05 * jax.random.normal(ks[2], (Cout,), jnp.float32),
        "w2": 0.1 * jax.random.normal(ks[3], (Cout, Cout, 3, 3), jnp.float32),
        "g2": 1.0 + 0.1 * jax.random.normal(ks[4], (Cout,), jnp.float32),
        "b2": 0.05 * jax.random.normal(ks[5], (Cout,), jnp.float32),
        "wsc": 0.1 * jax.random.normal(ks[6], (Cout, Cin, 1, 1), jnp.float32),
        "gsc": jnp.ones((Cout,), jnp.float32),
        "bsc": jnp.zeros((Cout,), jnp.float32),
    }
    x = jax.random.normal(ks[7], (N, Cin, H, W), jnp.float32)

    out = basic_block_forward(x, params, stride)
    out = jax.block_until_ready(out)

    ref = jax.block_until_ready(basic_block_reference(x, params, stride))
    assert out.shape == ref.shape == (N, Cout, H // stride, W // stride)
    # Tolerance widened vs. the pure-f32 version: the matmuls now run on the
    # MXU with bf16 inputs (f32 accumulation), as recommended.
    assert jnp.allclose(out, ref, atol=2e-2, rtol=2e-2), \
        f"max abs err = {jnp.max(jnp.abs(out - ref))}"

    print("KERNEL_OK")
</pallas_src>

<mosaic_0001>
module attributes {stable_mosaic.version = 11 : i64} {
  func.func @_matmul_stats_kernel(%arg0: i32, %arg1: memref<128x36xbf16, #tpu.memory_space<vmem>>, %arg2: memref<36x128xbf16, #tpu.memory_space<vmem>>, %arg3: memref<128x128xf32, #tpu.memory_space<vmem>>, %arg4: memref<1x2x128xf32, #tpu.memory_space<vmem>>) attributes {dimension_semantics = [#tpu.dimension_semantics<parallel>], iteration_bounds = array<i64: 1>, scalar_prefetch = 0 : i64, scratch_operands = 0 : i64, tpu.core_type = #tpu.core_type<tc>, window_params = [{transform_indices = @transform_0, window_bounds = array<i64: 128, 36>}, {pipeline_mode = #tpu.pipeline_mode<synchronous>, transform_indices = @transform_1, window_bounds = array<i64: 36, 128>}, {transform_indices = @transform_2, window_bounds = array<i64: 128, 128>}, {transform_indices = @transform_3, window_bounds = array<i64: 1, 2, 128>}]} {
    %c0 = arith.constant 0 : index
    %c0_0 = arith.constant 0 : index
    %0 = vector.load %arg1[%c0, %c0_0] : memref<128x36xbf16, #tpu.memory_space<vmem>>, vector<128x36xbf16>
    %c0_1 = arith.constant 0 : index
    %c0_2 = arith.constant 0 : index
    %1 = vector.load %arg2[%c0_1, %c0_2] : memref<36x128xbf16, #tpu.memory_space<vmem>>, vector<36x128xbf16>
    %cst = arith.constant dense<0.000000e+00> : vector<128x128xf32>
    %2 = tpu.matmul %0, %1, %cst {dimension_numbers = #tpu.dot_dimension_numbers<[1], [0], [0], [1], [0, 0, 1, 1], [], []>} : vector<128x36xbf16>, vector<36x128xbf16>, vector<128x128xf32> -> vector<128x128xf32>
    %c0_3 = arith.constant 0 : index
    %c0_4 = arith.constant 0 : index
    %3 = vector.load %arg3[%c0_3, %c0_4] : memref<128x128xf32, #tpu.memory_space<vmem>>, vector<128x128xf32>
    tpu.vector_store %arg3[%c0_3, %c0_4], %2 {strides = array<i32>} : memref<128x128xf32, #tpu.memory_space<vmem>>, vector<128x128xf32>,
    %c128_i32 = arith.constant 128 : i32
    %4 = arith.muli %arg0, %c128_i32 : i32
    %5 = tpu.iota {dimensions = array<i32: 0>} : vector<128x1xi32>
    %6 = vector.broadcast %4 : i32 to vector<128x1xi32>
    %7 = arith.addi %6, %5 : vector<128x1xi32>
    %c128_i32_5 = arith.constant 128 : i32
    %8 = vector.broadcast %c128_i32_5 : i32 to vector<128x1xi32>
    %9 = arith.cmpi slt, %7, %8 : vector<128x1xi32>
    %cst_6 = arith.constant 0.000000e+00 : f32
    %10 = vector.shape_cast %9 : vector<128x1xi1> to vector<128x1xi1>
    %11 = vector.broadcast %10 : vector<128x1xi1> to vector<128x128xi1>
    %12 = vector.broadcast %cst_6 : f32 to vector<128x128xf32>
    %13 = arith.select %11, %2, %12 : vector<128x128xi1>, vector<128x128xf32>
    %cst_7 = arith.constant dense<0.000000e+00> : vector<128xf32>
    %14 = vector.multi_reduction <add>, %13, %cst_7 [0] : vector<128x128xf32> to vector<128xf32>
    %15 = vector.shape_cast %14 : vector<128xf32> to vector<1x128xf32>
    %16 = arith.mulf %13, %13 : vector<128x128xf32>
    %cst_8 = arith.constant dense<0.000000e+00> : vector<128xf32>
    %17 = vector.multi_reduction <add>, %16, %cst_8 [0] : vector<128x128xf32> to vector<128xf32>
    %18 = vector.shape_cast %17 : vector<128xf32> to vector<1x128xf32>
    %19 = tpu.concatenate %15, %18 in 0 : vector<1x128xf32>, vector<1x128xf32> -> vector<2x128xf32>
    %c0_9 = arith.constant 0 : index
    %c0_10 = arith.constant 0 : index
    %c0_11 = arith.constant 0 : index
    %20 = vector.load %arg4[%c0_9, %c0_10, %c0_11] : memref<1x2x128xf32, #tpu.memory_space<vmem>>, vector<1x2x128xf32>
    %21 = vector.shape_cast %20 : vector<1x2x128xf32> to vector<2x128xf32>
    %22 = vector.shape_cast %19 : vector<2x128xf32> to vector<1x2x128xf32>
    tpu.vector_store %arg4[%c0_9, %c0_10, %c0_11], %22 {strides = array<i32>} : memref<1x2x128xf32, #tpu.memory_space<vmem>>, vector<1x2x128xf32>,
    return
  }
  func.func @transform_0(%arg0: i32) -> (i32, i32) {
    %c0_i32 = arith.constant 0 : i32
    %c0_i32_0 = arith.constant 0 : i32
    return %arg0, %c0_i32 : i32, i32
  }
  func.func @transform_1(%arg0: i32) -> (i32, i32) {
    %c0_i32 = arith.constant 0 : i32
    %c0_i32_0 = arith.constant 0 : i32
    %c0_i32_1 = arith.constant 0 : i32
    return %c0_i32, %c0_i32_0 : i32, i32
  }
  func.func @transform_2(%arg0: i32) -> (i32, i32) {
    %c0_i32 = arith.constant 0 : i32
    %c0_i32_0 = arith.constant 0 : i32
    return %arg0, %c0_i32 : i32, i32
  }
  func.func @transform_3(%arg0: i32) -> (i32, i32, i32) {
    %c0_i32 = arith.constant 0 : i32
    %c0_i32_0 = arith.constant 0 : i32
    %c0_i32_1 = arith.constant 0 : i32
    return %arg0, %c0_i32, %c0_i32_0 : i32, i32, i32
  }
}

</mosaic_0001>

<bundles_post_ra>
// kernel: tpu_custom_call.1
= control target key start
LH: loop header
LB: loop body
LE: loop exit
PB: predicated region body
PF: predicated region fallthrough
CT: control target
= control target key end

     0   :  { %9 = vsyncpa [#allocation3], 0  ;;  %vm92_vm0 = vcmask 293888   ;;  %vm117_vm1 = vcmask 1041408   ;;  %s654_s0 = inlined_call_operand.vmem [shape: bf16[128,36], index: 0, kind: input, shape index: {}]   ;;  %s655_s1 = inlined_call_operand.vmem [shape: bf16[36,128], index: 1, kind: input, shape index: {}]   ;;  %s656_s2 = inlined_call_operand.hbm [shape: f32[128,128], index: 2, kind: output, shape index: {0}]   ;;  %s657_s3 = inlined_call_operand.hbm [shape: f32[1,2,128], index: 3, kind: output, shape index: {1}]  }
   0x1   :  { %v488_v0 = vld [vmem:[%s655_s1] sm:$0xff]   ;;  %v489_v1 = vld [vmem:[%s655_s1 + $0x8] sm:$0xff]   ;;  %v490_v2 = vld [vmem:[%s655_s1 + $0x10] ss:$0 sps:$4 sm:$0x33]  }
   0x2   :  { %454 = vmatprep.subr.bf16.mxu0 %v488_v0  ;;  %v491_v3 = vld [vmem:[%s654_s0] sm:$0xff]   ;;  %476 = vmatprep.subr.bf16.mxu1 %v488_v0  ;;  %v119_v5 = vsel %vm117_vm1, %v490_v2, 0  ;;  %v492_v6 = vld [vmem:[%s654_s0 + $0x8] sm:$0xff]  }
   0x3   :  { %455 = vmatpush3.bf16.msra.mxu0 %v488_v0  ;;  %479 = vmatpush3.bf16.msra.mxu1 %v488_v0  ;;  %v495_v4 = vld [vmem:[%s654_s0 + $0x20] sm:$0xff]   ;;  %v496_v7 = vld [vmem:[%s654_s0 + $0x28] sm:$0xff]  }
   0x4   :  { %456 = vmatprep.subr.bf16.mxu0 %v489_v1  ;;  %460 = vmatprep.mubr.msk.bf16.mxu0 %vm92_vm0, %v491_v3 }
   0x5   :  { %477 = vmatprep.subr.bf16.mxu1 %v489_v1  ;;  %468 = vmatprep.mubr.msk.bf16.mxu1 %vm92_vm0, %v495_v4 }
   0x7   :  { %457 = vmatpush3.bf16.msra.mxu0 %v489_v1  ;;  %480 = vmatpush3.bf16.msra.mxu1 %v489_v1 }
   0x8   :  { %482 = vmatprep.subr.msk.bf16.mxu0 %vm117_vm1, %v490_v2  ;;  %483 = vmatprep.subr.msk.bf16.mxu1 %vm117_vm1, %v490_v2 }
   0x9   :  { %10 = vsyncpa [#allocation5], 0  ;;  %v493_v8 = vld [vmem:[%s654_s0 + $0x10] sm:$0xff]   ;;  %v494_v10 = vld [vmem:[%s654_s0 + $0x18] sm:$0xff]  }
   0xa   :  { %v497_v9 = vld [vmem:[%s654_s0 + $0x30] sm:$0xff]   ;;  %v498_v11 = vld [vmem:[%s654_s0 + $0x38] sm:$0xff]   ;;  %s547_s0 = smov [#allocation2]  }
   0xb   :  { %459 = vmatpush3.bf16.msra.mxu0 %v119_v5  ;;  %481 = vmatpush3.bf16.msra.mxu1 %v119_v5  ;;  %s399_s6 = sshll.u32 %s547_s0, 4  ;;  %s400_s6 = int_to_ptr.vmem [resolvable:$true] %s399_s6 }
   0xc   :  { %s499_s7 = scalar_lea.vmem %s400_s6, 2048  ;;  %p504_p1 = scmp.lt.s32.totalorder %s400_s6, %s400_s6 }
   0xd   :  { %p500_p0 = scmp.ne.s32.totalorder %s400_s6, %s499_s7  ;;  %p505_p2 = scmp.lt.s32.totalorder %s499_s7, %s499_s7 }
   0xe   :  { %461 = vmatmul.mubr.msk.bf16.vlgmr.msra.gmra.mrb[0].mxu0 %vm92_vm0, %v492_v6  ;;  %469 = vmatmul.mubr.msk.bf16.vlgmr.msra.gmra.mrb[0].mxu1 %vm92_vm0, %v496_v7 }
   0xf   :  { %464 = vmatprep.mubr.msk.bf16.mxu0 %vm92_vm0, %v493_v8  ;;  %472 = vmatprep.mubr.msk.bf16.mxu1 %vm92_vm0, %v497_v9  ;;  %p506_p3 = por %p505_p2, %p504_p1 }
  0x11   :  { %p507_p4 = pnand %p506_p3, %p500_p0 }
  0x16   :  { %465 = vmatmul.mubr.msk.bf16.gmra.mrb[4].mxu0 %vm92_vm0, %v494_v10  ;;  %473 = vmatmul.mubr.msk.bf16.gmra.mrb[4].mxu1 %vm92_vm0, %v498_v11 }
  0xe1   :  { %v462_v12 = vpop.f32.mrb[0].mxu0  ;;  %v612_v13 = vpop.f32.mrb[0].mxu1 }
  0xe2   :  { %220 = vst [vmem:[#allocation2 + $0x10] sm:$0xff] %v462_v12  ;;  %v155_v14 = vpop.f32.mrb[1].mxu0  ;;  %228 = vst [vmem:[#allocation2 + $0x50] sm:$0xff] %v612_v13  ;;  %v615_v15 = vpop.f32.mrb[1].mxu1  ;;  %v356_v23 = vmul.f32 %v462_v12, %v462_v12 }
  0xe3   :  { %218 = vst [vmem:[#allocation2] sm:$0xff] %v155_v14  ;;  %v463_v16 = vpop.f32.mrb[2].mxu0  ;;  %226 = vst [vmem:[#allocation2 + $0x40] sm:$0xff] %v615_v15  ;;  %v618_v17 = vpop.f32.mrb[2].mxu1  ;;  %v354_v20 = vmul.f32 %v155_v14, %v155_v14 }
  0xe4   :  { %221 = vst [vmem:[#allocation2 + $0x18] sm:$0xff] %v463_v16  ;;  %v158_v18 = vpop.f32.mrb[3].mxu0  ;;  %229 = vst [vmem:[#allocation2 + $0x58] sm:$0xff] %v618_v17  ;;  %v190_v19 = vpop.f32.mrb[3].mxu1  ;;  %v357_v26 = vmul.f32 %v463_v16, %v463_v16 }
  0xe5   :  { %219 = vst [vmem:[#allocation2 + $0x8] sm:$0xff] %v158_v18  ;;  %v333_v21 = vadd.f32 %v158_v18, %v155_v14  ;;  %v355_v22 = vmul.f32 %v158_v18, %v158_v18  ;;  %227 = vst [vmem:[#allocation2 + $0x48] sm:$0xff] %v190_v19 }
  0xe7   :  { %v334_v24 = vadd.f32 %v462_v12, %v333_v21  ;;  %v370_v25 = vadd.f32 %v355_v22, %v354_v20 }
  0xe9   :  { %v371_v27 = vadd.f32 %v370_v25, %v356_v23  ;;  %v466_v28 = vpop.f32.mrb[4].mxu0  ;;  %v335_v29 = vadd.f32 %v463_v16, %v334_v24  ;;  %v474_v30 = vpop.f32.mrb[4].mxu1 }
  0xea   :  { %224 = vst [vmem:[#allocation2 + $0x30] sm:$0xff] %v466_v28  ;;  %v171_v31 = vpop.f32.mrb[5].mxu0  ;;  %232 = vst [vmem:[#allocation2 + $0x70] sm:$0xff] %v474_v30  ;;  %v203_v32 = vpop.f32.mrb[5].mxu1 }
  0xeb   :  { %222 = vst [vmem:[#allocation2 + $0x20] sm:$0xff] %v171_v31  ;;  %v336_v33 = vadd.f32 %v335_v29, %v171_v31  ;;  %v358_v34 = vmul.f32 %v171_v31, %v171_v31  ;;  %v372_v35 = vadd.f32 %v371_v27, %v357_v26  ;;  %v467_v36 = vpop.f32.mrb[6].mxu0  ;;  %230 = vst [vmem:[#allocation2 + $0x60] sm:$0xff] %v203_v32  ;;  %v475_v37 = vpop.f32.mrb[6].mxu1 }
  0xec   :  { %225 = vst [vmem:[#allocation2 + $0x38] sm:$0xff] %v467_v36  ;;  %v174_v38 = vpop.f32.mrb[7].mxu0  ;;  %233 = vst [vmem:[#allocation2 + $0x78] sm:$0xff] %v475_v37  ;;  %v206_v39 = vpop.f32.mrb[7].mxu1 }
  0xed   :  { %v373_v40 = vadd.f32 %v372_v35, %v358_v34  ;;  %223 = vst [vmem:[#allocation2 + $0x28] sm:$0xff] %v174_v38  ;;  %v337_v41 = vadd.f32 %v336_v33, %v174_v38  ;;  %v359_v42 = vmul.f32 %v174_v38, %v174_v38  ;;  %231 = vst [vmem:[#allocation2 + $0x68] sm:$0xff] %v206_v39 }
  0xee   :  { %510 = shalt.err (!%p507_p4)
}
  0xef   :  { %s511_s10 = scalar_lea.hbm %s656_s2, 2048 }
  0xf0   :  { %p512_p5 = scmp.ne.s32.totalorder %s656_s2, %s511_s10  ;;  %p515_p6 = scmp.lt.u32.totalorder %s511_s10, %s656_s2 }
  0xf2   :  { %p517_p7 = pnand %p515_p6, %p512_p5 }
  0xf4   :  { %520 = shalt.err (!%p517_p7)
}
  0xf5   :  { %s548_s15 = smov 128   ;;  %s549_s16 = smov 8   ;;  %v360_v43 = vmul.f32 %v466_v28, %v466_v28  ;;  %v338_v44 = vadd.f32 %v466_v28, %v337_v41  ;;  %v374_v45 = vadd.f32 %v373_v40, %v359_v42  ;;  %v361_v46 = vmul.f32 %v467_v36, %v467_v36 }
  0xf6   :  { %405 = dma.vmem_to_hbm [thread:$0]  %s400_s6, 2048, %s656_s2, [#allocation3], %s548_s15, %s548_s15, %s549_s16   ;;  %v362_v49 = vmul.f32 %v615_v15, %v615_v15  ;;  %v363_v54 = vmul.f32 %v190_v19, %v190_v19  ;;  %v364_v55 = vmul.f32 %v612_v13, %v612_v13  ;;  %v365_v58 = vmul.f32 %v618_v17, %v618_v17 }
  0xf7   :  { %v375_v47 = vadd.f32 %v374_v45, %v360_v43  ;;  %v339_v48 = vadd.f32 %v467_v36, %v338_v44  ;;  %v366_v61 = vmul.f32 %v203_v32, %v203_v32  ;;  %v367_v2 = vmul.f32 %v206_v39, %v206_v39  ;;  %s550_s2 = smov [#allocation4]  }
  0xf8   :  { %v368_v3 = vmul.f32 %v474_v30, %v474_v30  ;;  %v369_v6 = vmul.f32 %v475_v37, %v475_v37  ;;  %s412_s19 = sshll.u32 %s550_s2, 4  ;;  %vm391_vm2 = vcmask 1040384   ;;  %s413_s19 = int_to_ptr.vmem [resolvable:$true] %s412_s19 }
  0xf9   :  { %v340_v50 = vadd.f32 %v339_v48, %v615_v15  ;;  %v376_v51 = vadd.f32 %v375_v47, %v361_v46  ;;  %s521_s20 = scalar_lea.vmem %s413_s19, 32  ;;  %p526_p9 = scmp.lt.s32.totalorder %s413_s19, %s413_s19 }
  0xfa   :  { %p522_p8 = scmp.ne.s32.totalorder %s413_s19, %s521_s20  ;;  %p527_p10 = scmp.lt.s32.totalorder %s521_s20, %s521_s20 }
  0xfb   :  { %v377_v52 = vadd.f32 %v376_v51, %v362_v49  ;;  %v341_v53 = vadd.f32 %v340_v50, %v190_v19 }
  0xfc   :  { %p528_p11 = por %p527_p10, %p526_p9 }
  0xfd   :  { %v342_v56 = vadd.f32 %v612_v13, %v341_v53  ;;  %v378_v57 = vadd.f32 %v377_v52, %v363_v54 }
  0xfe   :  { %p529_p12 = pnand %p528_p11, %p522_p8 }
  0xff   :  { %v379_v59 = vadd.f32 %v378_v57, %v364_v55  ;;  %v343_v60 = vadd.f32 %v618_v17, %v342_v56 }
 0x101   :  { %v344_v62 = vadd.f32 %v343_v60, %v203_v32  ;;  %v380_v63 = vadd.f32 %v379_v59, %v365_v58 }
 0x103   :  { %v381_v0 = vadd.f32 %v380_v63, %v366_v61  ;;  %v345_v1 = vadd.f32 %v344_v62, %v206_v39 }
 0x105   :  { %v346_v4 = vadd.f32 %v474_v30, %v345_v1  ;;  %v382_v5 = vadd.f32 %v381_v0, %v367_v2 }
 0x107   :  { %v347_v7 = vadd.f32 %v475_v37, %v346_v4  ;;  %v383_v8 = vadd.f32 %v382_v5, %v368_v3 }
 0x109   :  { %v348_v9 = vrot.slane %v347_v7, 4  ;;  %v384_v10 = vadd.f32 %v383_v8, %v369_v6 }
 0x10b   :  { %v349_v11 = vadd.f32 %v348_v9, %v347_v7  ;;  %v385_v12 = vrot.slane %v384_v10, 4 }
 0x10d   :  { %v350_v13 = vrot.slane %v349_v11, 2  ;;  %v386_v14 = vadd.f32 %v385_v12, %v384_v10 }
 0x10f   :  { %v351_v15 = vadd.f32 %v350_v13, %v349_v11  ;;  %v387_v16 = vrot.slane %v386_v14, 2 }
 0x111   :  { %v352_v17 = vrot.slane %v351_v15, 1  ;;  %v388_v18 = vadd.f32 %v387_v16, %v386_v14 }
 0x113   :  { %v389_v19 = vrot.slane %v388_v18, 1  ;;  %v353_v20 = vadd.f32 %v352_v17, %v351_v15 }
 0x115   :  { %v390_v21 = vadd.f32 %v389_v19, %v388_v18 }
 0x117   :  { %v392_v22 = vsel %vm391_vm2, %v353_v20, %v390_v21 }
 0x118   :  { %393 = vst [vmem:[#allocation4] sm:$0x3] %v392_v22 }
 0x119   :  { %532 = shalt.err (!%p529_p12)
}
 0x11a   :  { %s533_s22 = scalar_lea.hbm %s657_s3, 32 }
 0x11b   :  { %p534_p13 = scmp.ne.s32.totalorder %s657_s3, %s533_s22  ;;  %p537_p0 = scmp.lt.u32.totalorder %s533_s22, %s657_s3 }
 0x11d   :  { %p539_p1 = pnand %p537_p0, %p534_p13 }
 0x11f   :  { %542 = shalt.err (!%p539_p1)
}
 0x120   :  { %415 = dma.vmem_to_hbm [thread:$0]  %s413_s19, 32, %s657_s3, [#allocation5]  }
 0x121   :  { %543 = dma.done.wait [#allocation3], 2048  }
 0x122   :  { %544 = vsyncadd [#allocation3], 4294965248 }
 0x123   :  { %545 = dma.done.wait [#allocation5], 32  }
 0x124   :  { %546 = vsyncadd [#allocation5], 4294967264 }
 0x125   :  { %422 = vsyncpa [#allocation3], 1 }
 0x126   :  { %423 = vsyncpa [#allocation5], 1 }

</bundles_post_ra>
